<compile_context>
chip_gen: v7x
topology: tpu7x:2x2x1
jax: 0.10.0
libtpu: 0.0.40
codegen_flags: <defaults>
</compile_context>

<pallas_src>
import functools

import jax
import jax.numpy as jnp
from jax import lax
from jax.experimental import pallas as pl
from jax.experimental.pallas import tpu as pltpu


def _round_up(v, m):
    return ((v + m - 1) // m) * m


def char_rnn_seq_kernel(x_ref, h0_ref, w1x_ref, w1h_ref, b1_ref, w2_ref, b2_ref,
                        y_ref, hT_ref, h_state, *, num_valid_out):
    """One grid step == one timestep.  h_state (VMEM scratch) carries the
    recurrent hidden state across grid steps; weights are resident in VMEM."""
    t = pl.program_id(0)
    nt = pl.num_programs(0)

    # Initialize the recurrent state from h0 on the first timestep.
    @pl.when(t == 0)
    def _():
        h_state[...] = h0_ref[...].astype(jnp.float32)

    x = x_ref[0].astype(jnp.float32)          # (B, IP)
    h = h_state[...]                          # (B, HP), f32

    # concat(x, h) @ W1.T  rewritten as  x @ W1x + h @ W1h  (split weight,
    # numerically identical, avoids an in-kernel lane concat).
    pre = (jnp.dot(x, w1x_ref[...], preferred_element_type=jnp.float32)
           + jnp.dot(h, w1h_ref[...], preferred_element_type=jnp.float32)
           + b1_ref[...])
    h_new = jnp.maximum(pre, 0.0)             # relu; padded lanes stay 0
    h_state[...] = h_new

    # Output projection + softmax over the feature axis (== dim=0 of the
    # original 1-D vector).  Mask padded output lanes before max/exp.
    o = jnp.dot(h_new, w2_ref[...], preferred_element_type=jnp.float32) + b2_ref[...]
    lane = lax.broadcasted_iota(jnp.int32, o.shape, 1)
    o = jnp.where(lane < num_valid_out, o, -1e30)
    m = jnp.max(o, axis=-1, keepdims=True)
    e = jnp.exp(o - m)
    y = e / jnp.sum(e, axis=-1, keepdims=True)
    y_ref[0] = y.astype(y_ref.dtype)          # lane-dense (B, 128) store

    # Final hidden state written back only once, at the last timestep.
    @pl.when(t == nt - 1)
    def _():
        hT_ref[...] = h_new.astype(hT_ref.dtype)


@jax.jit
def char_rnn_sequence(x_seq, h0, w_i2h, b_i2h, w_h2o, b_h2o):
    """Run the RNN cell over a whole sequence in a single fused kernel.

    x_seq : (T, B, input_size)   h0 : (B, hidden_size)
    w_i2h : (hidden, input+hidden)  b_i2h : (hidden,)     [PyTorch layout]
    w_h2o : (output, hidden)        b_h2o : (output,)
    Returns (y_seq (T, B, output_size), h_final (B, hidden_size)).
    """
    T, B, input_size = x_seq.shape
    hidden_size = h0.shape[-1]
    output_size = w_h2o.shape[0]

    IP = _round_up(input_size, 128)   # lane-pad feature dims
    HP = _round_up(hidden_size, 128)
    OP = _round_up(output_size, 128)
    BP = _round_up(max(B, 8), 8)      # sublane-pad batch

    dtype = x_seq.dtype
    f32 = jnp.float32

    # Zero-padded activations.
    x_p = jnp.zeros((T, BP, IP), dtype).at[:, :B, :input_size].set(x_seq)
    h0_p = jnp.zeros((BP, HP), dtype).at[:B, :hidden_size].set(h0)

    # Pre-transposed, split and zero-padded weights (done once per call, not
    # once per timestep).
    w1 = w_i2h.T.astype(f32)                                   # (in+hid, hid)
    w1x = jnp.zeros((IP, HP), f32).at[:input_size, :hidden_size].set(w1[:input_size])
    w1h = jnp.zeros((HP, HP), f32).at[:hidden_size, :hidden_size].set(w1[input_size:])
    b1 = jnp.zeros((1, HP), f32).at[0, :hidden_size].set(b_i2h.astype(f32))
    w2 = jnp.zeros((HP, OP), f32).at[:hidden_size, :output_size].set(w_h2o.T.astype(f32))
    b2 = jnp.zeros((1, OP), f32).at[0, :output_size].set(b_h2o.astype(f32))

    kernel = functools.partial(char_rnn_seq_kernel, num_valid_out=output_size)

    const = lambda t: (0, 0)   # weights / biases / h0: resident, DMA'd once
    y_p, hT_p = pl.pallas_call(
        kernel,
        grid=(T,),
        in_specs=[
            pl.BlockSpec((1, BP, IP), lambda t: (t, 0, 0)),   # x_t
            pl.BlockSpec((BP, HP), const),                    # h0
            pl.BlockSpec((IP, HP), const),                    # W1x
            pl.BlockSpec((HP, HP), const),                    # W1h
            pl.BlockSpec((1, HP), const),                     # b1
            pl.BlockSpec((HP, OP), const),                    # W2
            pl.BlockSpec((1, OP), const),                     # b2
        ],
        out_specs=(
            pl.BlockSpec((1, BP, OP), lambda t: (t, 0, 0)),   # y_t
            pl.BlockSpec((BP, HP), const),                    # h_final
        ),
        out_shape=(
            jax.ShapeDtypeStruct((T, BP, OP), dtype),
            jax.ShapeDtypeStruct((BP, HP), dtype),
        ),
        scratch_shapes=[pltpu.VMEM((BP, HP), jnp.float32)],   # recurrent state
        compiler_params=pltpu.CompilerParams(
            dimension_semantics=("arbitrary",)),              # time is serial
    )(x_p, h0_p, w1x, w1h, b1, w2, b2)

    return y_p[:, :B, :output_size], hT_p[:B, :hidden_size]


def char_rnn_forward(x, h, w_i2h, b_i2h, w_h2o, b_h2o):
    """Exact semantics of myCharRnn.forward for a single (1-D x, h) step."""
    y_seq, h_final = char_rnn_sequence(x[None, None, :], h[None, :],
                                       w_i2h, b_i2h, w_h2o, b_h2o)
    return y_seq[0, 0], h_final[0]


if __name__ == "__main__":
    input_size, hidden_size, output_size = 16, 32, 24
    T, B = 12, 8

    key = jax.random.PRNGKey(0)
    k = jax.random.split(key, 6)
    # Deterministic init mimicking nn.Linear default: U(-1/sqrt(fan_in), +1/sqrt(fan_in)).
    bound1 = 1.0 / jnp.sqrt(float(input_size + hidden_size))
    bound2 = 1.0 / jnp.sqrt(float(hidden_size))
    w_i2h = jax.random.uniform(k[0], (hidden_size, input_size + hidden_size),
                               jnp.float32, -bound1, bound1)
    b_i2h = jax.random.uniform(k[1], (hidden_size,), jnp.float32, -bound1, bound1)
    w_h2o = jax.random.uniform(k[2], (output_size, hidden_size),
                               jnp.float32, -bound2, bound2)
    b_h2o = jax.random.uniform(k[3], (output_size,), jnp.float32, -bound2, bound2)

    x_seq = jax.random.normal(k[4], (T, B, input_size), jnp.float32)
    h0 = jax.random.normal(k[5], (B, hidden_size), jnp.float32)

    # Fused sequence kernel.
    y_seq, h_final = char_rnn_sequence(x_seq, h0, w_i2h, b_i2h, w_h2o, b_h2o)
    jax.block_until_ready((y_seq, h_final))

    # Reference: scan of the module's per-step forward.
    def ref_step(h, x):
        xh = jnp.concatenate([x, h], axis=-1)
        hs = jnp.maximum(xh @ w_i2h.T + b_i2h, 0.0)
        o = hs @ w_h2o.T + b_h2o
        return hs, jax.nn.softmax(o, axis=-1)

    h_ref, y_ref = lax.scan(ref_step, h0, x_seq)

    assert y_seq.shape == (T, B, output_size)
    assert h_final.shape == (B, hidden_size)
    assert jnp.allclose(y_seq, y_ref, atol=1e-4, rtol=1e-4)
    assert jnp.allclose(h_final, h_ref, atol=1e-4, rtol=1e-4)
    assert jnp.allclose(jnp.sum(y_seq, axis=-1), 1.0, atol=1e-5)

    # Single-step, unbatched path == the original module's forward exactly.
    y1, h1 = char_rnn_forward(x_seq[0, 0], h0[0], w_i2h, b_i2h, w_h2o, b_h2o)
    xh1 = jnp.concatenate([x_seq[0, 0], h0[0]])
    hs1 = jnp.maximum(xh1 @ w_i2h.T + b_i2h, 0.0)
    y1_ref = jax.nn.softmax(hs1 @ w_h2o.T + b_h2o, axis=0)
    assert y1.shape == (output_size,) and h1.shape == (hidden_size,)
    assert jnp.allclose(y1, y1_ref, atol=1e-4, rtol=1e-4)
    assert jnp.allclose(h1, hs1, atol=1e-4, rtol=1e-4)

    print("KERNEL_OK")
</pallas_src>

<mosaic_0001>
module attributes {stable_mosaic.version = 11 : i64} {
  func.func @char_rnn_seq_kernel(%arg0: i32, %arg1: memref<1x8x128xf32, #tpu.memory_space<vmem>>, %arg2: memref<8x128xf32, #tpu.memory_space<vmem>>, %arg3: memref<128x128xf32, #tpu.memory_space<vmem>>, %arg4: memref<128x128xf32, #tpu.memory_space<vmem>>, %arg5: memref<1x128xf32, #tpu.memory_space<vmem>>, %arg6: memref<128x128xf32, #tpu.memory_space<vmem>>, %arg7: memref<1x128xf32, #tpu.memory_space<vmem>>, %arg8: memref<1x8x128xf32, #tpu.memory_space<vmem>>, %arg9: memref<8x128xf32, #tpu.memory_space<vmem>>, %arg10: memref<8x128xf32, #tpu.memory_space<vmem>>) attributes {dimension_semantics = [#tpu.dimension_semantics<arbitrary>], iteration_bounds = array<i64: 12>, scalar_prefetch = 0 : i64, scratch_operands = 1 : i64, tpu.core_type = #tpu.core_type<tc>, window_params = [{transform_indices = @transform_0, window_bounds = array<i64: 1, 8, 128>}, {pipeline_mode = #tpu.pipeline_mode<synchronous>, transform_indices = @transform_1, window_bounds = array<i64: 8, 128>}, {pipeline_mode = #tpu.pipeline_mode<synchronous>, transform_indices = @transform_2, window_bounds = array<i64: 128, 128>}, {pipeline_mode = #tpu.pipeline_mode<synchronous>, transform_indices = @transform_3, window_bounds = array<i64: 128, 128>}, {pipeline_mode = #tpu.pipeline_mode<synchronous>, transform_indices = @transform_4, window_bounds = array<i64: 1, 128>}, {pipeline_mode = #tpu.pipeline_mode<synchronous>, transform_indices = @transform_5, window_bounds = array<i64: 128, 128>}, {pipeline_mode = #tpu.pipeline_mode<synchronous>, transform_indices = @transform_6, window_bounds = array<i64: 1, 128>}, {transform_indices = @transform_7, window_bounds = array<i64: 1, 8, 128>}, {pipeline_mode = #tpu.pipeline_mode<synchronous>, transform_indices = @transform_8, window_bounds = array<i64: 8, 128>}]} {
    %c0_i32 = arith.constant 0 : i32
    %0 = arith.cmpi eq, %arg0, %c0_i32 : i32
    %1 = arith.extui %0 : i1 to i32
    %c0_i32_0 = arith.constant 0 : i32
    %2 = arith.cmpi ne, %1, %c0_i32_0 : i32
    scf.if %2 {
      %c0_27 = arith.constant 0 : index
      %c0_28 = arith.constant 0 : index
      %42 = vector.load %arg2[%c0_27, %c0_28] : memref<8x128xf32, #tpu.memory_space<vmem>>, vector<8x128xf32>
      %c0_29 = arith.constant 0 : index
      %c0_30 = arith.constant 0 : index
      %43 = vector.load %arg10[%c0_29, %c0_30] : memref<8x128xf32, #tpu.memory_space<vmem>>, vector<8x128xf32>
      tpu.vector_store %arg10[%c0_29, %c0_30], %42 {strides = array<i32>} : memref<8x128xf32, #tpu.memory_space<vmem>>, vector<8x128xf32>,
    } else {
    }
    %c0 = arith.constant 0 : index
    %c0_1 = arith.constant 0 : index
    %c0_2 = arith.constant 0 : index
    %3 = vector.load %arg1[%c0, %c0_1, %c0_2] : memref<1x8x128xf32, #tpu.memory_space<vmem>>, vector<1x8x128xf32>
    %4 = vector.shape_cast %3 : vector<1x8x128xf32> to vector<8x128xf32>
    %c0_3 = arith.constant 0 : index
    %c0_4 = arith.constant 0 : index
    %5 = vector.load %arg10[%c0_3, %c0_4] : memref<8x128xf32, #tpu.memory_space<vmem>>, vector<8x128xf32>
    %c0_5 = arith.constant 0 : index
    %c0_6 = arith.constant 0 : index
    %6 = vector.load %arg3[%c0_5, %c0_6] : memref<128x128xf32, #tpu.memory_space<vmem>>, vector<128x128xf32>
    %cst = arith.constant dense<0.000000e+00> : vector<8x128xf32>
    %7 = tpu.matmul %4, %6, %cst {dimension_numbers = #tpu.dot_dimension_numbers<[1], [0], [0], [1], [0, 0, 1, 1], [], []>} : vector<8x128xf32>, vector<128x128xf32>, vector<8x128xf32> -> vector<8x128xf32>
    %c0_7 = arith.constant 0 : index
    %c0_8 = arith.constant 0 : index
    %8 = vector.load %arg4[%c0_7, %c0_8] : memref<128x128xf32, #tpu.memory_space<vmem>>, vector<128x128xf32>
    %cst_9 = arith.constant dense<0.000000e+00> : vector<8x128xf32>
    %9 = tpu.matmul %5, %8, %cst_9 {dimension_numbers = #tpu.dot_dimension_numbers<[1], [0], [0], [1], [0, 0, 1, 1], [], []>} : vector<8x128xf32>, vector<128x128xf32>, vector<8x128xf32> -> vector<8x128xf32>
    %10 = arith.addf %7, %9 : vector<8x128xf32>
    %c0_10 = arith.constant 0 : index
    %c0_11 = arith.constant 0 : index
    %11 = vector.load %arg5[%c0_10, %c0_11] : memref<1x128xf32, #tpu.memory_space<vmem>>, vector<1x128xf32>
    %12 = vector.broadcast %11 : vector<1x128xf32> to vector<8x128xf32>
    %13 = arith.addf %10, %12 : vector<8x128xf32>
    %cst_12 = arith.constant 0.000000e+00 : f32
    %14 = vector.broadcast %cst_12 : f32 to vector<8x128xf32>
    %15 = arith.maximumf %13, %14 : vector<8x128xf32>
    %c0_13 = arith.constant 0 : index
    %c0_14 = arith.constant 0 : index
    %16 = vector.load %arg10[%c0_13, %c0_14] : memref<8x128xf32, #tpu.memory_space<vmem>>, vector<8x128xf32>
    tpu.vector_store %arg10[%c0_13, %c0_14], %15 {strides = array<i32>} : memref<8x128xf32, #tpu.memory_space<vmem>>, vector<8x128xf32>,
    %c0_15 = arith.constant 0 : index
    %c0_16 = arith.constant 0 : index
    %17 = vector.load %arg6[%c0_15, %c0_16] : memref<128x128xf32, #tpu.memory_space<vmem>>, vector<128x128xf32>
    %cst_17 = arith.constant dense<0.000000e+00> : vector<8x128xf32>
    %18 = tpu.matmul %15, %17, %cst_17 {dimension_numbers = #tpu.dot_dimension_numbers<[1], [0], [0], [1], [0, 0, 1, 1], [], []>} : vector<8x128xf32>, vector<128x128xf32>, vector<8x128xf32> -> vector<8x128xf32>
    %c0_18 = arith.constant 0 : index
    %c0_19 = arith.constant 0 : index
    %19 = vector.load %arg7[%c0_18, %c0_19] : memref<1x128xf32, #tpu.memory_space<vmem>>, vector<1x128xf32>
    %20 = vector.broadcast %19 : vector<1x128xf32> to vector<8x128xf32>
    %21 = arith.addf %18, %20 : vector<8x128xf32>
    %22 = tpu.iota {dimensions = array<i32: 1>} : vector<8x128xi32>
    %c24_i32 = arith.constant 24 : i32
    %23 = vector.broadcast %c24_i32 : i32 to vector<8x128xi32>
    %24 = arith.cmpi slt, %22, %23 : vector<8x128xi32>
    %cst_20 = arith.constant -1.000000e+30 : f32
    %25 = vector.broadcast %cst_20 : f32 to vector<8x128xf32>
    %26 = arith.select %24, %21, %25 : vector<8x128xi1>, vector<8x128xf32>
    %cst_21 = arith.constant dense<0xFF800000> : vector<8xf32>
    %27 = vector.multi_reduction <maximumf>, %26, %cst_21 [1] : vector<8x128xf32> to vector<8xf32>
    %28 = vector.shape_cast %27 : vector<8xf32> to vector<8x1xf32>
    %29 = vector.broadcast %28 : vector<8x1xf32> to vector<8x128xf32>
    %30 = arith.subf %26, %29 : vector<8x128xf32>
    %31 = math.exp %30 : vector<8x128xf32>
    %cst_22 = arith.constant dense<0.000000e+00> : vector<8xf32>
    %32 = vector.multi_reduction <add>, %31, %cst_22 [1] : vector<8x128xf32> to vector<8xf32>
    %33 = vector.shape_cast %32 : vector<8xf32> to vector<8x1xf32>
    %34 = vector.broadcast %33 : vector<8x1xf32> to vector<8x128xf32>
    %35 = arith.divf %31, %34 : vector<8x128xf32>
    %c0_23 = arith.constant 0 : index
    %c0_24 = arith.constant 0 : index
    %c0_25 = arith.constant 0 : index
    %36 = vector.load %arg8[%c0_23, %c0_24, %c0_25] : memref<1x8x128xf32, #tpu.memory_space<vmem>>, vector<1x8x128xf32>
    %37 = vector.shape_cast %36 : vector<1x8x128xf32> to vector<8x128xf32>
    %38 = vector.shape_cast %35 : vector<8x128xf32> to vector<1x8x128xf32>
    tpu.vector_store %arg8[%c0_23, %c0_24, %c0_25], %38 {strides = array<i32>} : memref<1x8x128xf32, #tpu.memory_space<vmem>>, vector<1x8x128xf32>,
    %c11_i32 = arith.constant 11 : i32
    %39 = arith.cmpi eq, %arg0, %c11_i32 : i32
    %40 = arith.extui %39 : i1 to i32
    %c0_i32_26 = arith.constant 0 : i32
    %41 = arith.cmpi ne, %40, %c0_i32_26 : i32
    scf.if %41 {
      %c0_27 = arith.constant 0 : index
      %c0_28 = arith.constant 0 : index
      %42 = vector.load %arg9[%c0_27, %c0_28] : memref<8x128xf32, #tpu.memory_space<vmem>>, vector<8x128xf32>
      tpu.vector_store %arg9[%c0_27, %c0_28], %15 {strides = array<i32>} : memref<8x128xf32, #tpu.memory_space<vmem>>, vector<8x128xf32>,
    } else {
    }
    return
  }
  func.func @transform_0(%arg0: i32) -> (i32, i32, i32) {
    %c0_i32 = arith.constant 0 : i32
    %c0_i32_0 = arith.constant 0 : i32
    %c0_i32_1 = arith.constant 0 : i32
    return %arg0, %c0_i32, %c0_i32_0 : i32, i32, i32
  }
  func.func @transform_1(%arg0: i32) -> (i32, i32) {
    %c0_i32 = arith.constant 0 : i32
    %c0_i32_0 = arith.constant 0 : i32
    %c0_i32_1 = arith.constant 0 : i32
    return %c0_i32, %c0_i32_0 : i32, i32
  }
  func.func @transform_2(%arg0: i32) -> (i32, i32) {
    %c0_i32 = arith.constant 0 : i32
    %c0_i32_0 = arith.constant 0 : i32
    %c0_i32_1 = arith.constant 0 : i32
    return %c0_i32, %c0_i32_0 : i32, i32
  }
  func.func @transform_3(%arg0: i32) -> (i32, i32) {
    %c0_i32 = arith.constant 0 : i32
    %c0_i32_0 = arith.constant 0 : i32
    %c0_i32_1 = arith.constant 0 : i32
    return %c0_i32, %c0_i32_0 : i32, i32
  }
  func.func @transform_4(%arg0: i32) -> (i32, i32) {
    %c0_i32 = arith.constant 0 : i32
    %c0_i32_0 = arith.constant 0 : i32
    %c0_i32_1 = arith.constant 0 : i32
    return %c0_i32, %c0_i32_0 : i32, i32
  }
  func.func @transform_5(%arg0: i32) -> (i32, i32) {
    %c0_i32 = arith.constant 0 : i32
    %c0_i32_0 = arith.constant 0 : i32
    %c0_i32_1 = arith.constant 0 : i32
    return %c0_i32, %c0_i32_0 : i32, i32
  }
  func.func @transform_6(%arg0: i32) -> (i32, i32) {
    %c0_i32 = arith.constant 0 : i32
    %c0_i32_0 = arith.constant 0 : i32
    %c0_i32_1 = arith.constant 0 : i32
    return %c0_i32, %c0_i32_0 : i32, i32
  }
  func.func @transform_7(%arg0: i32) -> (i32, i32, i32) {
    %c0_i32 = arith.constant 0 : i32
    %c0_i32_0 = arith.constant 0 : i32
    %c0_i32_1 = arith.constant 0 : i32
    return %arg0, %c0_i32, %c0_i32_0 : i32, i32, i32
  }
  func.func @transform_8(%arg0: i32) -> (i32, i32) {
    %c0_i32 = arith.constant 0 : i32
    %c0_i32_0 = arith.constant 0 : i32
    %c0_i32_1 = arith.constant 0 : i32
    return %c0_i32, %c0_i32_0 : i32, i32
  }
}

</mosaic_0001>

<bundles_post_ra>
// kernel: char_rnn_sequence.1
= control target key start
LH: loop header
LB: loop body
LE: loop exit
PB: predicated region body
PF: predicated region fallthrough
CT: control target
= control target key end

     0   :  { %14 = vsyncpa [#allocation4], 0  ;;  %s1455_s0 = inlined_call_operand.vmem [shape: f32[12,8,128], index: 0, kind: input, shape index: {}]   ;;  %s1456_s1 = inlined_call_operand.vmem [shape: f32[8,128], index: 1, kind: input, shape index: {}]   ;;  %s1457_s2 = inlined_call_operand.vmem [shape: f32[128,128], index: 2, kind: input, shape index: {}]   ;;  %s1458_s3 = inlined_call_operand.vmem [shape: f32[128,128], index: 3, kind: input, shape index: {}]   ;;  %s1459_s4 = inlined_call_operand.vmem [shape: f32[1,128], index: 4, kind: input, shape index: {}]   ;;  %s1460_s5 = inlined_call_operand.vmem [shape: f32[128,128], index: 5, kind: input, shape index: {}]   ;;  %s1461_s6 = inlined_call_operand.vmem [shape: f32[1,128], index: 6, kind: input, shape index: {}]   ;;  %s1462_s7 = inlined_call_operand.hbm [shape: f32[12,8,128], index: 7, kind: output, shape index: {0}]   ;;  %s1463_s8 = inlined_call_operand.hbm [shape: f32[8,128], index: 8, kind: output, shape index: {1}]  }
   0x1   :  { %16 = vsyncpa [#allocation4 + $0x1], 0 }
   0x2   :  { %17 = vsyncpa [#allocation6], 0  ;;  %s1138_s27 = smov 0   ;;  %s1140_s28 = smov 0  }
   0x3   :  { %s1142_s29 = smov 0   ;;  %s1144_s30 = smov 0  }
   0x4 LB: > { %s1159_s9 = sadd.s32 4294967295, %s1086_s30   ;;  %s697_s10 = sadd.s32 4294967294, %s1086_s30   ;;  %s1086_s30 = sphi %s1144_s30, %s1472_s30   ;;  %s1082_s29 = sphi %s1142_s29, %s1471_s29   ;;  %s1078_s28 = sphi %s1140_s28, %s1470_s28   ;;  %s1074_s27 = sphi %s1138_s27, %s1469_s27  }
   0x5   : > { %s1163_s11 = sadd.s32 1, %s1086_s30   ;;  %s182_s12 = sadd.s32 1, %s1082_s29 }
   0x6   : > { %s179_s13 = ssub.s32 %s1086_s30, %s1163_s11  ;;  %p192_p0 = scmp.ne.s32.totalorder %s1082_s29, %s1078_s28 }
   0x7   : > { %p180_p1 = scmp.eq.s32.totalorder %s179_s13, 0  ;;  %p193_p2 = scmp.eq.s32.totalorder %s1159_s9, 11 }
   0x8   : > { %p198_p3 = scmp.ne.s32.totalorder %s1078_s28, %s1074_s27  ;;  %p199_p4 = scmp.eq.s32.totalorder %s697_s10, 11 }
   0x9   : > { %s1174_s14 = scalar_select %p180_p1, %s1082_s29, %s182_s12  }
   0xa   : > { %p1178_p5 = por %p193_p2, %p192_p0  ;;  %p1182_p6 = por %p199_p4, %p198_p3 }
   0xb   : > { %p700_p7 = scmp.ge.s32.totalorder %s1086_s30, 1  ;;  %p263_p8 = scmp.lt.s32.totalorder %s1086_s30, 13 }
   0xc   : > { %s1466_s16 = scalar_select %p1182_p6, 1, 0 }
   0xd   : > { %p264_p9 = pnand %p700_p7, %p263_p8 }
   0xe   : > { %s1464_s17 = sand.u32 (!%p264_p9), 1, %s1078_s28   ;;  %p296_p10 = scmp.lt.s32.totalorder (!%p264_p9), %s1159_s9, 11 }
   0xf   : > { %267 = sbr.rel (%p264_p9) target bundleno = 861 (0x35d), region = 48  ;;  %s1192_s18 = sshll.u32 (!%p264_p9), %s1464_s17, 3 }
  0x10   : > { %s293_s24 = scalar_lea.vmem (!%p264_p9), [#allocation3], %s1192_s18  ;;  %p703_p11 = scmp.ne.s32.totalorder (!%p264_p9), %s1159_s9, 0 }
  0x16   : > { %s297_s19 = scalar_select %p296_p10, %s1159_s9, 11 }
  0x17   : > { %303 = sbr.rel (%p703_p11) target bundleno = 30 (0x1e), region = 52  ;;  %v304_v0 = vld [vmem:[%s1456_s1] sm:$0xff] (!%p703_p11) }
  0x18   : > { %s702_s20 = sshll.u32 %s297_s19, 3  ;;  %305 = vst [vmem:[#allocation2] sm:$0xff] (!%p703_p11), %v304_v0 }
  0x19   : > { %s1198_s23 = scalar_lea.vmem %s1455_s0, %s702_s20 }
  0x1e PF: > { %v324_v1 = vld [vmem:[%s1458_s3] sm:$0xff]  ;;  %v325_v2 = vld [vmem:[%s1458_s3 + $0x8] sm:$0xff]  ;;  %v1088_v4 = vmov 0.0|0.0   ;;  %v326_v7 = vld [vmem:[%s1458_s3 + $0x10] sm:$0xff]  ;;  %vm1089_vm0 = vmmov 0   ;;  %v1090_v12 = vmov 0.0  }
  0x1f   : > { %v308_v3 = vld [vmem:[%s1457_s2] sm:$0xff]  ;;  %869 = vmatprep.subr.bf16.mxu0 %v1088_v4  ;;  %893 = vmatprep.subr.bf16.mxu1 %v1088_v4  ;;  %v870_v5 = vpack.c.bf16 %v325_v2, %v324_v1  ;;  %v309_v6 = vld [vmem:[%s1457_s2 + $0x8] sm:$0xff]  ;;  %v327_v8 = vld [vmem:[%s1458_s3 + $0x18] sm:$0xff]  ;;  %p706_p12 = scmp.ne.s32.totalorder %s1159_s9, 11 }
  0x20   : > { %v894_v9 = vpack.c.bf16 %v309_v6, %v308_v3  ;;  %v310_v10 = vld [vmem:[%s1457_s2 + $0x10] sm:$0xff]  ;;  %v311_v11 = vld [vmem:[%s1457_s2 + $0x18] sm:$0xff]  ;;  %796 = vmatprep.mubr.msk.f32.mxu0 %vm1089_vm0, %v1090_v12  ;;  %831 = vmatprep.mubr.msk.f32.mxu1 %vm1089_vm0, %v1090_v12  ;;  %v873_v13 = vpack.c.bf16 %v327_v8, %v326_v7  ;;  %v328_v15 = vld [vmem:[%s1458_s3 + $0x20] sm:$0xff] }
  0x21   : > { %871 = vmatpush3.bf16.msra.mxu0 %v870_v5  ;;  %v897_v14 = vpack.c.bf16 %v311_v11, %v310_v10  ;;  %v329_v16 = vld [vmem:[%s1458_s3 + $0x28] sm:$0xff]  ;;  %v312_v17 = vld [vmem:[%s1457_s2 + $0x20] sm:$0xff]  ;;  %v330_v21 = vld [vmem:[%s1458_s3 + $0x30] sm:$0xff] }
  0x22   : > { %895 = vmatpush3.bf16.msra.mxu1 %v894_v9  ;;  %872 = vmatprep.subr.bf16.mxu0 %v1088_v4  ;;  %v313_v18 = vld [vmem:[%s1457_s2 + $0x28] sm:$0xff]  ;;  %v876_v19 = vpack.c.bf16 %v329_v16, %v328_v15  ;;  %v331_v22 = vld [vmem:[%s1458_s3 + $0x38] sm:$0xff]  ;;  %v314_v23 = vld [vmem:[%s1457_s2 + $0x30] sm:$0xff] }
  0x23   : > { %896 = vmatprep.subr.bf16.mxu1 %v1088_v4  ;;  %v900_v20 = vpack.c.bf16 %v313_v18, %v312_v17  ;;  %v315_v24 = vld [vmem:[%s1457_s2 + $0x38] sm:$0xff]  ;;  %v879_v25 = vpack.c.bf16 %v331_v22, %v330_v21  ;;  %v332_v27 = vld [vmem:[%s1458_s3 + $0x40] sm:$0xff]  ;;  %v333_v28 = vld [vmem:[%s1458_s3 + $0x48] sm:$0xff]  ;;  %v583_v21 = vlaneseq }
  0x24   : > { %v903_v26 = vpack.c.bf16 %v315_v24, %v314_v23  ;;  %v316_v29 = vld [vmem:[%s1457_s2 + $0x40] sm:$0xff]  ;;  %v317_v30 = vld [vmem:[%s1457_s2 + $0x48] sm:$0xff]  ;;  %v882_v31 = vpack.c.bf16 %v333_v28, %v332_v27  ;;  %v334_v33 = vld [vmem:[%s1458_s3 + $0x50] sm:$0xff] }
  0x25   : > { %874 = vmatpush3.bf16.msra.mxu0 %v873_v13  ;;  %v906_v32 = vpack.c.bf16 %v317_v30, %v316_v29  ;;  %v335_v34 = vld [vmem:[%s1458_s3 + $0x58] sm:$0xff]  ;;  %v318_v35 = vld [vmem:[%s1457_s2 + $0x50] sm:$0xff]  ;;  %v336_v39 = vld [vmem:[%s1458_s3 + $0x60] sm:$0xff]  ;;  %v584_v22 = vand.u32 127, %v583_v21 }
  0x26   : > { %898 = vmatpush3.bf16.msra.mxu1 %v897_v14  ;;  %875 = vmatprep.subr.bf16.mxu0 %v1088_v4  ;;  %v319_v36 = vld [vmem:[%s1457_s2 + $0x58] sm:$0xff]  ;;  %v885_v37 = vpack.c.bf16 %v335_v34, %v334_v33  ;;  %v337_v40 = vld [vmem:[%s1458_s3 + $0x68] sm:$0xff]  ;;  %v320_v41 = vld [vmem:[%s1457_s2 + $0x60] sm:$0xff] }
  0x27   : > { %899 = vmatprep.subr.bf16.mxu1 %v1088_v4  ;;  %v909_v38 = vpack.c.bf16 %v319_v36, %v318_v35  ;;  %v321_v42 = vld [vmem:[%s1457_s2 + $0x68] sm:$0xff]  ;;  %v888_v43 = vpack.c.bf16 %v337_v40, %v336_v39  ;;  %v338_v45 = vld [vmem:[%s1458_s3 + $0x70] sm:$0xff]  ;;  %v339_v46 = vld [vmem:[%s1458_s3 + $0x78] sm:$0xff]  ;;  %vm585_vm1 = vcmp.lt.s32.totalorder %v584_v22, 24 }
  0x28   : > { %v912_v44 = vpack.c.bf16 %v321_v42, %v320_v41  ;;  %v322_v47 = vld [vmem:[%s1457_s2 + $0x70] sm:$0xff]  ;;  %v323_v48 = vld [vmem:[%s1457_s2 + $0x78] sm:$0xff]  ;;  %v891_v49 = vpack.c.bf16 %v339_v46, %v338_v45  ;;  %v490_v51 = vld [vmem:[%s1460_s5] sm:$0xff] }
  0x29   : > { %877 = vmatpush3.bf16.msra.mxu0 %v876_v19  ;;  %v915_v50 = vpack.c.bf16 %v323_v48, %v322_v47  ;;  %v491_v52 = vld [vmem:[%s1460_s5 + $0x8] sm:$0xff]  ;;  %v307_v53 = vld [vmem:[#allocation2] sm:$0xff]  ;;  %v492_v56 = vld [vmem:[%s1460_s5 + $0x10] sm:$0xff] }
  0x2a   : > { %901 = vmatpush3.bf16.msra.mxu1 %v900_v20  ;;  %878 = vmatprep.subr.bf16.mxu0 %v1088_v4  ;;  %v918_v54 = vpack.c.bf16 %v491_v52, %v490_v51  ;;  %v306_v55 = vld [vmem:[%s1198_s23] sm:$0xff]  ;;  %v493_v57 = vld [vmem:[%s1460_s5 + $0x18] sm:$0xff]  ;;  %v495_v60 = vld [vmem:[%s1460_s5 + $0x28] sm:$0xff] }
  0x2b   : > { %902 = vmatprep.subr.bf16.mxu1 %v1088_v4  ;;  %v921_v58 = vpack.c.bf16 %v493_v57, %v492_v56  ;;  %v494_v59 = vld [vmem:[%s1460_s5 + $0x20] sm:$0xff]  ;;  %v496_v62 = vld [vmem:[%s1460_s5 + $0x30] sm:$0xff]  ;;  %v497_v63 = vld [vmem:[%s1460_s5 + $0x38] sm:$0xff] }
  0x2c   : > { %v924_v61 = vpack.c.bf16 %v495_v60, %v494_v59  ;;  %v927_v0 = vpack.c.bf16 %v497_v63, %v496_v62  ;;  %v498_v1 = vld [vmem:[%s1460_s5 + $0x40] sm:$0xff]  ;;  %v499_v2 = vld [vmem:[%s1460_s5 + $0x48] sm:$0xff]  ;;  %v500_v5 = vld [vmem:[%s1460_s5 + $0x50] sm:$0xff] }
  0x2d   : > { %880 = vmatpush3.bf16.msra.mxu0 %v879_v25  ;;  %v930_v3 = vpack.c.bf16 %v499_v2, %v498_v1  ;;  %v501_v6 = vld [vmem:[%s1460_s5 + $0x58] sm:$0xff]  ;;  %v502_v8 = vld [vmem:[%s1460_s5 + $0x60] sm:$0xff]  ;;  %v503_v9 = vld [vmem:[%s1460_s5 + $0x68] sm:$0xff] }
  0x2e   : > { %904 = vmatpush3.bf16.msra.mxu1 %v903_v26  ;;  %881 = vmatprep.subr.bf16.mxu0 %v1088_v4  ;;  %v933_v7 = vpack.c.bf16 %v501_v6, %v500_v5  ;;  %v936_v10 = vpack.c.bf16 %v503_v9, %v502_v8  ;;  %v504_v11 = vld [vmem:[%s1460_s5 + $0x70] sm:$0xff]  ;;  %v704_v16 = vld [vmem:[%s1459_s4] ss:$0 sm:$0xff] }
  0x2f   : > { %905 = vmatprep.subr.bf16.mxu1 %v1088_v4  ;;  %v705_v23 = vld [vmem:[%s1461_s6] ss:$0 sm:$0xff] }
  0x31   : > { %883 = vmatpush3.bf16.msra.mxu0 %v882_v31 }
  0x32   : > { %907 = vmatpush3.bf16.msra.mxu1 %v906_v32  ;;  %884 = vmatprep.subr.bf16.mxu0 %v1088_v4 }
  0x33   : > { %908 = vmatprep.subr.bf16.mxu1 %v1088_v4 }
  0x35   : > { %886 = vmatpush3.bf16.msra.mxu0 %v885_v37 }
  0x36   : > { %910 = vmatpush3.bf16.msra.mxu1 %v909_v38  ;;  %887 = vmatprep.subr.bf16.mxu0 %v1088_v4 }
  0x37   : > { %911 = vmatprep.subr.bf16.mxu1 %v1088_v4 }
  0x39   : > { %889 = vmatpush3.bf16.msra.mxu0 %v888_v43 }
  0x3a   : > { %913 = vmatpush3.bf16.msra.mxu1 %v912_v44  ;;  %890 = vmatprep.subr.bf16.mxu0 %v1088_v4 }
  0x3b   : > { %914 = vmatprep.subr.bf16.mxu1 %v1088_v4 }
  0x3d   : > { %892 = vmatpush3.bf16.msra.mxu0 %v891_v49 }
  0x3e   : > { %916 = vmatpush3.bf16.msra.mxu1 %v915_v50  ;;  %917 = vmatprep.subr.bf16.mxu0 %v1088_v4 }
  0x40   : > { %797 = vmatmul.mubr.f32.vlgmr.msra.gmra.mrb[0].mxu0 %v307_v53 }
  0x41   : > { %832 = vmatmul.mubr.f32.vlgmr.msra.gmra.mrb[0].mxu1 %v306_v55  ;;  %919 = vmatpush3.bf16.msra.mxu0 %v918_v54 }
  0x42   : > { %920 = vmatprep.subr.bf16.mxu0 %v1088_v4  ;;  %866 = vmatprep.mubr.msk.f32.mxu0 %vm1089_vm0, %v1090_v12  ;;  %v505_v12 = vld [vmem:[%s1460_s5 + $0x78] sm:$0xff] }
  0x43   : > { %v939_v13 = vpack.c.bf16 %v505_v12, %v504_v11 }
  0x45   : > { %922 = vmatpush3.bf16.msra.mxu0 %v921_v58 }
  0x46   : > { %923 = vmatprep.subr.bf16.mxu0 %v1088_v4 }
  0x49   : > { %925 = vmatpush3.bf16.msra.mxu0 %v924_v61 }
  0x4a   : > { %926 = vmatprep.subr.bf16.mxu0 %v1088_v4 }
  0x4d   : > { %928 = vmatpush3.bf16.msra.mxu0 %v927_v0 }
  0x4e   : > { %929 = vmatprep.subr.bf16.mxu0 %v1088_v4 }
  0x51   : > { %931 = vmatpush3.bf16.msra.mxu0 %v930_v3 }
  0x52   : > { %932 = vmatprep.subr.bf16.mxu0 %v1088_v4 }
  0x55   : > { %934 = vmatpush3.bf16.msra.mxu0 %v933_v7 }
  0x56   : > { %935 = vmatprep.subr.bf16.mxu0 %v1088_v4 }
  0x59   : > { %937 = vmatpush3.bf16.msra.mxu0 %v936_v10 }
  0x5a   : > { %938 = vmatprep.subr.bf16.mxu0 %v1088_v4 }
  0x5d   : > { %940 = vmatpush3.bf16.msra.mxu0 %v939_v13 }
 0x113   : > { %v406_v14 = vpop.f32.mrb[0].mxu0 }
 0x114   : > { %v476_v15 = vpop.f32.mrb[0].mxu1  ;;  %v798_v17 = vpop.f32.mrb[1].mxu0 }
 0x115   : > { %v477_v18 = vadd.f32 %v476_v15, %v406_v14  ;;  %v833_v19 = vpop.f32.mrb[1].mxu1 }
 0x117   : > { %v487_v4 = vadd.f32 %v704_v16, %v477_v18 }
 0x119   : > { %v488_v20 = vmax.f32 %v487_v4, 0.0 }
 0x11b   : > { %489 = vst [vmem:[#allocation2] sm:$0xff] %v488_v20  ;;  %867 = vmatmul.mubr.f32.vlgmr.msra.gmra.mrb[2].mxu0 %v488_v20  ;;  %601 = vst [vmem:[#allocation5] sm:$0xff] (!%p706_p12), %v488_v20 }
 0x1ee   : > { %v579_v24 = vpop.f32.mrb[2].mxu0 }
 0x1ef   : > { %v580_v25 = vadd.f32 %v705_v23, %v579_v24  ;;  %v868_v26 = vpop.f32.mrb[3].mxu0 }
 0x1f1   : > { %v586_v27 = vsel %vm585_vm1, %v580_v25, -1e+30 }
 0x1f2   : > { %587 = vmax.xlane.f32.xlu0 %v586_v27 }
 0x27f   : > { %v588_v28 = vpop.xlane.xlu0 %587 }
 0x280   : > { %v589_v29 = vsub.f32 %v586_v27, %v588_v28 }
 0x282   : > { %v590_v30 = vmul.f32 1.442695, %v589_v29 }
 0x284   : > { %990 = vpow2.f32 %v590_v30 }
 0x28e   : > { %v991_v31 = vpop.eup %990 }
 0x28f   : > { %592 = vadd.xlane.f32.xlu0 %v991_v31 }
 0x31c   : > { %v593_v32 = vpop.xlane.xlu0 %592 }
 0x31d   : > { %992 = vrcp.f32 %v593_v32 }
 0x324   : > { %600 = sbr.rel (%p706_p12) target bundleno = 811 (0x32b), region = 56 }
 0x327   : > { %v993_v33 = vpop.eup %992 }
 0x328   : > { %v595_v34 = vmul.f32 %v993_v33, %v991_v31 }
 0x32a   : > { %596 = vst [vmem:[%s293_s24] sm:$0xff] %v595_v34 }
 0x32b PF: > { %s708_s25 = sshll.u32 %s1159_s9, 7  ;;  %s616_s12 = sshll.u32 %s293_s24, 4  ;;  %s617_s12 = int_to_ptr.vmem [resolvable:$true] %s616_s12 }
 0x32c   : > { %s1393_s10 = scalar_lea.hbm %s1462_s7, %s708_s25  ;;  %s1467_s13 = sand.u32 1, %s1078_s28  }
 0x32d   : > { %s603_s19 = scalar_lea.sflag [#allocation4], %s1467_s13  ;;  %s994_s23 = scalar_lea.vmem %s617_s12, 128 }
 0x32e   : > { %p995_p13 = scmp.ne.s32.totalorder %s617_s12, %s994_s23  ;;  %s1091_s20 = smov [#allocation3]  }
 0x32f   : > { %s998_s21 = sshll.u32 %s1091_s20, 4  ;;  %s999_s21 = int_to_ptr.vmem [resolvable:$false] %s998_s21 }
 0x330   : > { %p996_p0 = pnand %p995_p13, %p1178_p5  ;;  %s1000_s22 = scalar_lea.vmem %s999_s21, 256 }
 0x331   : > { %p1001_p3 = scmp.lt.s32.totalorder %s617_s12, %s999_s21  ;;  %p1002_p4 = scmp.lt.s32.totalorder %s1000_s22, %s994_s23 }
 0x332   : > { %p997_p1 = pneg %p996_p0 }
 0x333   : > { %p1003_p7 = por %p1002_p4, %p1001_p3 }
 0x335   : > { %p1004_p8 = pnand %p1003_p7, %p997_p1 }
 0x337   : > { %1007 = shalt.err (!%p1004_p8)
}
 0x338   : > { %s1008_s18 = scalar_lea.hbm %s1393_s10, 128  ;;  %s1012_s17 = scalar_lea.hbm %s1462_s7, 1536 }
 0x339   : > { %p1009_p9 = scmp.ne.s32.totalorder %s1393_s10, %s1008_s18  ;;  %p1013_p12 = scmp.lt.u32.totalorder %s1393_s10, %s1462_s7 }
 0x33a   : > { %p1014_p13 = scmp.lt.u32.totalorder %s1012_s17, %s1008_s18  ;;  %p1016_p1 = scmp.lt.u32.totalorder %s1008_s18, %s1393_s10 }
 0x33b   : > { %p1010_p10 = pnand %p1009_p9, %p1178_p5 }
 0x33c   : > { %p1015_p0 = por %p1014_p13, %p1013_p12 }
 0x33d   : > { %p1011_p11 = pneg %p1010_p10 }
 0x33e   : > { %p1017_p3 = por %p1016_p1, %p1015_p0 }
 0x340   : > { %p1018_p4 = pnand %p1017_p3, %p1011_p11 }
 0x342   : > { %1021 = shalt.err (!%p1018_p4)
}
 0x343   : > { %941 = dma.vmem_to_hbm [thread:$0]  (%p1178_p5), %s617_s12, 128, %s1393_s10, %s603_s19  }
 0x344   : > { %s1092_s23 = smov [#allocation5]  }
 0x345   : > { %s627_s20 = sshll.u32 %s1092_s23, 4  ;;  %s628_s20 = int_to_ptr.vmem [resolvable:$true] %s627_s20 }
 0x346   : > { %s1022_s21 = scalar_lea.vmem %s628_s20, 128  ;;  %p1029_p10 = scmp.lt.s32.totalorder %s628_s20, %s628_s20 }
 0x347   : > { %p1023_p7 = scmp.ne.s32.totalorder %s628_s20, %s1022_s21  ;;  %p1030_p6 = scmp.lt.s32.totalorder %s1022_s21, %s1022_s21 }
 0x349   : > { %p1024_p8 = pnand %p1023_p7, %p193_p2  ;;  %p1031_p12 = por %p1030_p6, %p1029_p10 }
 0x34b   : > { %p1025_p9 = pneg %p1024_p8 }
 0x34d   : > { %p1032_p13 = pnand %p1031_p12, %p1025_p9 }
 0x34f   : > { %1035 = shalt.err (!%p1032_p13)
}
 0x350   : > { %s1036_s15 = scalar_lea.hbm %s1463_s8, 128 }
 0x351   : > { %p1037_p5 = scmp.ne.s32.totalorder %s1463_s8, %s1036_s15  ;;  %p1042_p1 = scmp.lt.u32.totalorder %s1036_s15, %s1463_s8 }
 0x353   : > { %p1038_p11 = pnand %p1037_p5, %p193_p2 }
 0x355   : > { %p1039_p0 = pneg %p1038_p11 }
 0x357   : > { %p1044_p3 = pnand %p1042_p1, %p1039_p0 }
 0x359   : > { %1047 = shalt.err (!%p1044_p3)
}
 0x35a   : > { %943 = dma.vmem_to_hbm [thread:$0]  (%p193_p2), %s628_s20, 128, %s1463_s8, [#allocation6]  }
 0x35b   : > { %1065 = dma.done.wait (%p193_p2), [#allocation6], 128  }
 0x35c   : > { %1067 = vsyncadd (%p193_p2), [#allocation6], 4294967168 }
 0x35d PF: > { %p953_p6 = scmp.ge.s32.totalorder %s1086_s30, 2  ;;  %s643_s26 = sand.u32 1, %s1074_s27  }
 0x35e   : > { %p1468_p4 = scmp.ne.s32.totalorder %s1466_s16, 0  ;;  %s644_s13 = scalar_lea.sflag [#allocation4], %s643_s26 }
 0x360   : > { %p948_p7 = pnand %p953_p6, %p1468_p4 }
 0x362   : > { %1069 = dma.done.wait (!%p948_p7), %s644_s13, 128  }
 0x363   : > { %1071 = vsyncadd (!%p948_p7), %s644_s13, 4294967168  ;;  %p20_p8 = scmp.ge.s32.totalorder %s1163_s11, 14   ;;  %s1469_s27 = smov %s1078_s28 }
 0x364   : > { %s1470_s28 = smov %s1082_s29  ;;  %s1471_s29 = smov %s1174_s14 }
 0x365   : > { %s1472_s30 = smov %s1163_s11  ;;  %22 = sbr.rel (!%p20_p8) target bundleno = 4 (0x4), region = 99 }
 0x36c   :  { %649 = vsyncpa [#allocation4], 1 }
 0x36d   :  { %651 = vsyncpa [#allocation4 + $0x1], 1 }
 0x36e   :  { %652 = vsyncpa [#allocation6], 1 }

</bundles_post_ra>
